<compile_context>
chip_gen: v7x
topology: tpu7x:2x2x1
jax: 0.10.0
libtpu: 0.0.40
codegen_flags: <defaults>
</compile_context>

<pallas_src>
import functools

import jax
import jax.numpy as jnp
from jax import lax
from jax.experimental import pallas as pl
from jax.experimental.pallas import tpu as pltpu

# ----------------------------------------------------------------------------
# Renderer configuration (soft_renderer.Renderer defaults, image_size shrunk)
# ----------------------------------------------------------------------------
IMAGE_SIZE = 16                 # default 256; small demo size
ANTI_ALIASING = True            # render at 2x, then 2x2 average pool
BACKGROUND_COLOR = (0.0, 0.0, 0.0)
NEAR, FAR = 1.0, 100.0
RAST_EPS = 1e-6
FILL_BACK = True
ORIG_SIZE = 512
PROJ_EPS = 1e-9                 # eps used inside srf.projection

LIGHT_INT_AMBIENT = 0.5
LIGHT_COLOR_AMBIENT = (1.0, 1.0, 1.0)
LIGHT_INT_DIRECTIONAL = 0.5
LIGHT_COLOR_DIRECTIONAL = (1.0, 1.0, 1.0)
LIGHT_DIRECTION = (0.0, 1.0, 0.0)

_LANE_CHUNK = 512               # faces / vertices per grid step in lighting/transform
_FACE_UNROLL = 4                # unroll factor of the per-face rasterizer loops


def _round_up(n, m):
    return -(-n // m) * m


def _lane_pad_and_chunk(n):
    """Pad a lane dimension to a multiple of 128 and pick a per-grid-step chunk."""
    p = _round_up(max(n, 1), 128)
    if p > _LANE_CHUNK:
        p = _round_up(p, _LANE_CHUNK)
    return p, min(p, _LANE_CHUNK)


def _pad_last(a, target):
    pad = target - a.shape[-1]
    if pad == 0:
        return a
    return jnp.pad(a, [(0, 0)] * (a.ndim - 1) + [(0, pad)])


# ----------------------------------------------------------------------------
# Kernel 1: surface lighting (face normals -> ambient + directional -> textures)
#   face vertices laid out as [B, 9, F] (rows = x0,y0,z0,...,z2; lanes = faces),
#   textures as [B, 3, F] (texture_res == 1).  Single full-block store.
# ----------------------------------------------------------------------------
def _lighting_kernel(fv_ref, tex_ref, out_ref, *, amb_int, amb_color,
                     dir_int, dir_color, light_dir):
    fv = fv_ref[...]                                    # (1, 9, Fc)
    x0, y0, z0 = fv[:, 0:1, :], fv[:, 1:2, :], fv[:, 2:3, :]
    x1, y1, z1 = fv[:, 3:4, :], fv[:, 4:5, :], fv[:, 5:6, :]
    x2, y2, z2 = fv[:, 6:7, :], fv[:, 7:8, :], fv[:, 8:9, :]
    # Mesh.surface_normals: v10 = v0 - v1, v12 = v2 - v1, n = normalize(cross(v12, v10))
    ax, ay, az = x2 - x1, y2 - y1, z2 - z1              # v12
    bx, by, bz = x0 - x1, y0 - y1, z0 - z1              # v10
    nx = ay * bz - az * by
    ny = az * bx - ax * bz
    nz = ax * by - ay * bx
    inv = 1.0 / jnp.maximum(jnp.sqrt(nx * nx + ny * ny + nz * nz), 1e-6)
    cosine = jnp.maximum(
        (nx * light_dir[0] + ny * light_dir[1] + nz * light_dir[2]) * inv, 0.0)
    dterm = dir_int * cosine                            # hoisted once, (1, 1, Fc)
    # per-channel constants built elementwise (no concat, no per-channel stores)
    ch = lax.broadcasted_iota(jnp.int32, (1, 3, 1), 1)
    amb = jnp.where(ch == 0, amb_int * amb_color[0],
                    jnp.where(ch == 1, amb_int * amb_color[1],
                              amb_int * amb_color[2]))
    dcol = jnp.where(ch == 0, dir_color[0],
                     jnp.where(ch == 1, dir_color[1], dir_color[2]))
    light = amb + dcol * dterm                          # (1, 3, Fc)
    out_ref[...] = tex_ref[...] * light                 # single full-block store


def _lighting_call(fv_t, tex_t, chunk):
    B, _, Fp = fv_t.shape
    assert Fp % chunk == 0
    kernel = functools.partial(
        _lighting_kernel,
        amb_int=LIGHT_INT_AMBIENT, amb_color=LIGHT_COLOR_AMBIENT,
        dir_int=LIGHT_INT_DIRECTIONAL, dir_color=LIGHT_COLOR_DIRECTIONAL,
        light_dir=LIGHT_DIRECTION)
    return pl.pallas_call(
        kernel,
        out_shape=jax.ShapeDtypeStruct((B, 3, Fp), jnp.float32),
        grid=(B, Fp // chunk),
        in_specs=[pl.BlockSpec((1, 9, chunk), lambda b, j: (b, 0, j)),
                  pl.BlockSpec((1, 3, chunk), lambda b, j: (b, 0, j))],
        out_specs=pl.BlockSpec((1, 3, chunk), lambda b, j: (b, 0, j)),
        compiler_params=pltpu.CompilerParams(
            dimension_semantics=("parallel", "parallel")),
    )(fv_t, tex_t)


# ----------------------------------------------------------------------------
# Kernel 2: projection transform (bmm with P, perspective divide, distortion,
#           orig_size normalization) -- mirrors srf.projection()
#   vertices as [B, 3, V] (rows = x,y,z, lanes = vertices); P / dist in SMEM.
# ----------------------------------------------------------------------------
def _transform_kernel(p_ref, dist_ref, v_ref, out_ref, *, orig_size, eps):
    # p_ref: SMEM (B, 12) row-major 3x4 ; dist_ref: SMEM (B, 5) = [k1,k2,p1,p2,k3]
    b = pl.program_id(0)
    v = v_ref[...]                                      # (1, 3, Vc)
    x, y, z = v[:, 0:1, :], v[:, 1:2, :], v[:, 2:3, :]
    xc = p_ref[b, 0] * x + p_ref[b, 1] * y + p_ref[b, 2] * z + p_ref[b, 3]
    yc = p_ref[b, 4] * x + p_ref[b, 5] * y + p_ref[b, 6] * z + p_ref[b, 7]
    zc = p_ref[b, 8] * x + p_ref[b, 9] * y + p_ref[b, 10] * z + p_ref[b, 11]
    inv_zc = pl.reciprocal(zc + eps, approx=False)      # one divide instead of two
    x_ = xc * inv_zc
    y_ = yc * inv_zc
    k1, k2 = dist_ref[b, 0], dist_ref[b, 1]
    p1, p2, k3 = dist_ref[b, 2], dist_ref[b, 3], dist_ref[b, 4]
    r2 = x_ * x_ + y_ * y_                              # sqrt eliminated: only even powers
    r4 = r2 * r2
    r6 = r4 * r2
    radial = 1.0 + k1 * r2 + k2 * r4 + k3 * r6
    xy = x_ * y_
    x__ = x_ * radial + 2.0 * p1 * xy + p2 * (r2 + 2.0 * x_ * x_)
    y__ = y_ * radial + p1 * (r2 + 2.0 * y_ * y_) + 2.0 * p2 * xy
    scale = 2.0 / orig_size
    x__ = (x__ - 0.5 * orig_size) * scale
    y__ = (y__ - 0.5 * orig_size) * scale
    out_ref[:, 0:1, :] = x__
    out_ref[:, 1:2, :] = y__
    out_ref[:, 2:3, :] = zc


def _transform_call(P_flat, dist_coeffs, v_t, chunk):
    B, _, Vp = v_t.shape
    assert Vp % chunk == 0
    kernel = functools.partial(_transform_kernel, orig_size=float(ORIG_SIZE),
                               eps=PROJ_EPS)
    return pl.pallas_call(
        kernel,
        out_shape=jax.ShapeDtypeStruct((B, 3, Vp), jnp.float32),
        grid=(B, Vp // chunk),
        in_specs=[pl.BlockSpec(memory_space=pltpu.MemorySpace.SMEM),
                  pl.BlockSpec(memory_space=pltpu.MemorySpace.SMEM),
                  pl.BlockSpec((1, 3, chunk), lambda b, j: (b, 0, j))],
        out_specs=pl.BlockSpec((1, 3, chunk), lambda b, j: (b, 0, j)),
        compiler_params=pltpu.CompilerParams(
            dimension_semantics=("parallel", "parallel")),
    )(P_flat, dist_coeffs, v_t)


# ----------------------------------------------------------------------------
# Kernel 3: hard z-buffer rasterizer (NMR-style forward_face_index_map + texture
#           sampling for texture_res == 1).
#   Lane-dense pixel slab (H*W/128, 128); unrolled per-face loop over SMEM
#   scalars carrying (depth, face id); second pass resolves RGB; one reciprocal
#   on the EUP per face instead of per-pixel divides.
# ----------------------------------------------------------------------------
def _rasterize_kernel(fv_ref, col_ref, out_ref, *, num_faces, image_size,
                      near, far, background, eps, unroll):
    b = pl.program_id(0)
    S = image_size
    NP = (S * S) // 128

    # lane-dense pixel coordinates: linear pixel index p = out_row * S + out_col
    lin = (lax.broadcasted_iota(jnp.int32, (NP, 128), 0) * 128
           + lax.broadcasted_iota(jnp.int32, (NP, 128), 1))
    prow = lin // S                                     # output row, 0 = top
    pcol = lin - prow * S
    inv_s = 1.0 / S
    xp = (2.0 * pcol.astype(jnp.float32) + (1.0 - S)) * inv_s
    yp = (2.0 * ((S - 1) - prow).astype(jnp.float32) + (1.0 - S)) * inv_s

    depth0 = jnp.full((NP, 128), far, jnp.float32)
    lidx0 = jnp.full((NP, 128), -1, jnp.int32)

    def face_body(f, carry):
        depth, lidx = carry
        base = f * 9
        x0 = fv_ref[b, base + 0]; y0 = fv_ref[b, base + 1]; z0 = fv_ref[b, base + 2]
        x1 = fv_ref[b, base + 3]; y1 = fv_ref[b, base + 4]; z1 = fv_ref[b, base + 5]
        x2 = fv_ref[b, base + 6]; y2 = fv_ref[b, base + 7]; z2 = fv_ref[b, base + 8]
        # per-face scalar terms (scalar unit, not VALU)
        det = (x1 - x0) * (y2 - y0) - (x2 - x0) * (y1 - y0)
        det_ok = det != 0.0
        inv_det = 1.0 / jnp.where(det_ok, det, 1.0)
        iz0 = 1.0 / z0
        iz1 = 1.0 / z1
        iz2 = 1.0 / z2
        # per-pixel barycentric weights (== face_inv @ [xp, yp, 1] in the CUDA kernel)
        dx0 = x0 - xp; dy0 = y0 - yp
        dx1 = x1 - xp; dy1 = y1 - yp
        dx2 = x2 - xp; dy2 = y2 - yp
        w0 = (dx1 * dy2 - dx2 * dy1) * inv_det
        w1 = (dx2 * dy0 - dx0 * dy2) * inv_det
        w2 = (dx0 * dy1 - dx1 * dy0) * inv_det
        # w0 + w1 + w2 == 1, so all-nonnegative already implies each <= 1
        inside = (w0 >= 0.0) & (w1 >= 0.0) & (w2 >= 0.0) & det_ok
        # clip + renormalize, then depth = wsum / sum(w_k / z_k)
        w0c = jnp.clip(w0, 0.0, 1.0)
        w1c = jnp.clip(w1, 0.0, 1.0)
        w2c = jnp.clip(w2, 0.0, 1.0)
        wsum = jnp.maximum(w0c + w1c + w2c, eps)
        zp = wsum * pl.reciprocal(w0c * iz0 + w1c * iz1 + w2c * iz2, approx=True)
        valid = inside & (zp > near) & (zp < far) & (zp < depth)
        depth = jnp.where(valid, zp, depth)
        lidx = jnp.where(valid, f, lidx)
        return depth, lidx

    depth, lidx = lax.fori_loop(0, num_faces, face_body, (depth0, lidx0),
                                unroll=unroll)

    # second pass: resolve RGB from the winning face index
    def color_body(f, carry):
        cr, cg, cb = carry
        won = lidx == f
        cr = jnp.where(won, col_ref[b, f * 3 + 0], cr)
        cg = jnp.where(won, col_ref[b, f * 3 + 1], cg)
        cb = jnp.where(won, col_ref[b, f * 3 + 2], cb)
        return cr, cg, cb

    r0 = jnp.full((NP, 128), background[0], jnp.float32)
    g0 = jnp.full((NP, 128), background[1], jnp.float32)
    b0 = jnp.full((NP, 128), background[2], jnp.float32)
    cr, cg, cb = lax.fori_loop(0, num_faces, color_body, (r0, g0, b0),
                               unroll=unroll)
    alpha = jnp.where(depth < far, jnp.float32(1.0), jnp.float32(0.0))

    # four full (NP,128) tile stores -- fully lane-dense, unmasked
    out_ref[:, 0:1, :, :] = cr.reshape(1, 1, NP, 128)
    out_ref[:, 1:2, :, :] = cg.reshape(1, 1, NP, 128)
    out_ref[:, 2:3, :, :] = cb.reshape(1, 1, NP, 128)
    out_ref[:, 3:4, :, :] = alpha.reshape(1, 1, NP, 128)


def _rasterize_call(fv_flat, col_flat, *, num_faces, image_size):
    B = fv_flat.shape[0]
    assert (image_size * image_size) % 128 == 0
    NP = (image_size * image_size) // 128
    kernel = functools.partial(
        _rasterize_kernel, num_faces=num_faces, image_size=image_size,
        near=NEAR, far=FAR, background=BACKGROUND_COLOR, eps=RAST_EPS,
        unroll=min(_FACE_UNROLL, num_faces))
    return pl.pallas_call(
        kernel,
        out_shape=jax.ShapeDtypeStruct((B, 4, NP, 128), jnp.float32),
        grid=(B,),
        in_specs=[pl.BlockSpec(memory_space=pltpu.MemorySpace.SMEM),
                  pl.BlockSpec(memory_space=pltpu.MemorySpace.SMEM)],
        out_specs=pl.BlockSpec((1, 4, NP, 128), lambda b: (b, 0, 0, 0)),
        compiler_params=pltpu.CompilerParams(dimension_semantics=("parallel",)),
    )(fv_flat, col_flat)


# ----------------------------------------------------------------------------
# Renderer.forward: lighting -> transform -> rasterize (glue in plain JAX)
# ----------------------------------------------------------------------------
def renderer_forward(vertices, faces, textures, P, dist_coeffs):
    B, V, _ = vertices.shape
    F_faces = faces.shape[0]
    assert textures.shape[2] == 1  # TODO(synk): texture_res > 1 texel sampling not implemented

    # 1) Lighting (surface mode) on the *untransformed* mesh; lanes padded to x128
    F_pad, f_chunk = _lane_pad_and_chunk(F_faces)
    fv0 = vertices[:, faces, :]                                   # [B, F, 3, 3]
    fv0_t = _pad_last(fv0.reshape(B, F_faces, 9).transpose(0, 2, 1), F_pad)
    tex_t = _pad_last(textures[:, :, 0, :].transpose(0, 2, 1), F_pad)
    lit_t = _lighting_call(fv0_t, tex_t, f_chunk)                 # [B, 3, F_pad]
    lit_colors = lit_t[:, :, :F_faces].transpose(0, 2, 1)         # [B, F, 3]

    # 2) Transform (projection camera); vertex lanes padded to x128
    V_pad, v_chunk = _lane_pad_and_chunk(V)
    v_t = _pad_last(vertices.transpose(0, 2, 1), V_pad)           # [B, 3, V_pad]
    v_proj_t = _transform_call(P.reshape(B, 12), dist_coeffs, v_t, v_chunk)
    vertices_p = v_proj_t[:, :, :V].transpose(0, 2, 1)            # [B, V, 3]

    # 3) Rasterize (hard z-buffer) -- fill_back doubles faces with reversed winding
    fvp = vertices_p[:, faces, :]                                 # [B, F, 3, 3]
    colors = lit_colors
    if FILL_BACK:
        fvp = jnp.concatenate([fvp, fvp[:, :, ::-1, :]], axis=1)
        colors = jnp.concatenate([colors, colors], axis=1)
    nfb = fvp.shape[1]
    s2 = IMAGE_SIZE * (2 if ANTI_ALIASING else 1)
    # TODO(synk): for very large meshes, tile faces over an 'arbitrary' grid axis
    # (chunked DMA) instead of keeping the whole per-face table resident in SMEM.
    out = _rasterize_call(fvp.reshape(B, nfb * 9), colors.reshape(B, nfb * 3),
                          num_faces=nfb, image_size=s2)           # [B,4,s2*s2/128,128]
    images = out.reshape(B, 4, s2, s2)
    # TODO(synk): 'silhouettes' / 'depth' render modes of the CUDA rasterizer not implemented.

    if ANTI_ALIASING:
        # F.avg_pool2d(images, kernel_size=2, stride=2) -- trivial glue
        images = images.reshape(B, 4, IMAGE_SIZE, 2, IMAGE_SIZE, 2).mean(axis=(3, 5))
    return images


if __name__ == "__main__":
    key = jax.random.PRNGKey(0)
    kv, kt = jax.random.split(key)

    B, V, F_FACES = 2, 8, 6
    vertices = jax.random.uniform(kv, (B, V, 3), jnp.float32, -0.5, 0.5)
    faces = jnp.array([[0, 1, 2], [2, 3, 4], [4, 5, 6],
                       [1, 3, 5], [0, 2, 4], [1, 4, 6]], jnp.int32)
    textures = jax.random.uniform(kt, (B, F_FACES, 1, 3), jnp.float32, 0.0, 1.0)

    # Deterministic (B, 3, 4) projection matrices: pinhole K @ [I | t_z]
    focal = float(ORIG_SIZE)
    cx = cy = ORIG_SIZE / 2.0
    K = jnp.array([[focal, 0.0, cx],
                   [0.0, focal, cy],
                   [0.0, 0.0, 1.0]], jnp.float32)
    P = jnp.stack([
        K @ jnp.array([[1., 0., 0., 0.],
                       [0., 1., 0., 0.],
                       [0., 0., 1., 3.0 + 0.25 * b]], jnp.float32)
        for b in range(B)
    ])                                                            # [B, 3, 4]
    dist_coeffs = jnp.zeros((B, 5), jnp.float32)

    images = renderer_forward(vertices, faces, textures, P, dist_coeffs)
    jax.block_until_ready(images)
    assert images.shape == (B, 4, IMAGE_SIZE, IMAGE_SIZE)
    print("KERNEL_OK")
</pallas_src>

<mosaic_0001>
module attributes {stable_mosaic.version = 11 : i64} {
  func.func @_lighting_kernel(%arg0: i32, %arg1: i32, %arg2: memref<1x9x128xf32, #tpu.memory_space<vmem>>, %arg3: memref<1x3x128xf32, #tpu.memory_space<vmem>>, %arg4: memref<1x3x128xf32, #tpu.memory_space<vmem>>) attributes {dimension_semantics = [#tpu.dimension_semantics<parallel>, #tpu.dimension_semantics<parallel>], iteration_bounds = array<i64: 2, 1>, scalar_prefetch = 0 : i64, scratch_operands = 0 : i64, tpu.core_type = #tpu.core_type<tc>, window_params = [{transform_indices = @transform_0, window_bounds = array<i64: 1, 9, 128>}, {transform_indices = @transform_1, window_bounds = array<i64: 1, 3, 128>}, {transform_indices = @transform_2, window_bounds = array<i64: 1, 3, 128>}]} {
    %c0 = arith.constant 0 : index
    %c0_0 = arith.constant 0 : index
    %c0_1 = arith.constant 0 : index
    %0 = vector.load %arg2[%c0, %c0_0, %c0_1] : memref<1x9x128xf32, #tpu.memory_space<vmem>>, vector<1x9x128xf32>
    %1 = vector.extract_strided_slice %0 {offsets = [0, 0, 0], sizes = [1, 1, 128], strides = [1, 1, 1]} : vector<1x9x128xf32> to vector<1x1x128xf32>
    %2 = vector.extract_strided_slice %0 {offsets = [0, 1, 0], sizes = [1, 1, 128], strides = [1, 1, 1]} : vector<1x9x128xf32> to vector<1x1x128xf32>
    %3 = vector.extract_strided_slice %0 {offsets = [0, 2, 0], sizes = [1, 1, 128], strides = [1, 1, 1]} : vector<1x9x128xf32> to vector<1x1x128xf32>
    %4 = vector.extract_strided_slice %0 {offsets = [0, 3, 0], sizes = [1, 1, 128], strides = [1, 1, 1]} : vector<1x9x128xf32> to vector<1x1x128xf32>
    %5 = vector.extract_strided_slice %0 {offsets = [0, 4, 0], sizes = [1, 1, 128], strides = [1, 1, 1]} : vector<1x9x128xf32> to vector<1x1x128xf32>
    %6 = vector.extract_strided_slice %0 {offsets = [0, 5, 0], sizes = [1, 1, 128], strides = [1, 1, 1]} : vector<1x9x128xf32> to vector<1x1x128xf32>
    %7 = vector.extract_strided_slice %0 {offsets = [0, 6, 0], sizes = [1, 1, 128], strides = [1, 1, 1]} : vector<1x9x128xf32> to vector<1x1x128xf32>
    %8 = vector.extract_strided_slice %0 {offsets = [0, 7, 0], sizes = [1, 1, 128], strides = [1, 1, 1]} : vector<1x9x128xf32> to vector<1x1x128xf32>
    %9 = vector.extract_strided_slice %0 {offsets = [0, 8, 0], sizes = [1, 1, 128], strides = [1, 1, 1]} : vector<1x9x128xf32> to vector<1x1x128xf32>
    %10 = arith.subf %7, %4 : vector<1x1x128xf32>
    %11 = arith.subf %8, %5 : vector<1x1x128xf32>
    %12 = arith.subf %9, %6 : vector<1x1x128xf32>
    %13 = arith.subf %1, %4 : vector<1x1x128xf32>
    %14 = arith.subf %2, %5 : vector<1x1x128xf32>
    %15 = arith.subf %3, %6 : vector<1x1x128xf32>
    %16 = arith.mulf %11, %15 : vector<1x1x128xf32>
    %17 = arith.mulf %12, %14 : vector<1x1x128xf32>
    %18 = arith.subf %16, %17 : vector<1x1x128xf32>
    %19 = arith.mulf %12, %13 : vector<1x1x128xf32>
    %20 = arith.mulf %10, %15 : vector<1x1x128xf32>
    %21 = arith.subf %19, %20 : vector<1x1x128xf32>
    %22 = arith.mulf %10, %14 : vector<1x1x128xf32>
    %23 = arith.mulf %11, %13 : vector<1x1x128xf32>
    %24 = arith.subf %22, %23 : vector<1x1x128xf32>
    %25 = arith.mulf %18, %18 : vector<1x1x128xf32>
    %26 = arith.mulf %21, %21 : vector<1x1x128xf32>
    %27 = arith.addf %25, %26 : vector<1x1x128xf32>
    %28 = arith.mulf %24, %24 : vector<1x1x128xf32>
    %29 = arith.addf %27, %28 : vector<1x1x128xf32>
    %30 = math.sqrt %29 : vector<1x1x128xf32>
    %cst = arith.constant 9.99999997E-7 : f32
    %31 = vector.broadcast %cst : f32 to vector<1x1x128xf32>
    %32 = arith.maximumf %30, %31 : vector<1x1x128xf32>
    %cst_2 = arith.constant 1.000000e+00 : f32
    %33 = vector.broadcast %cst_2 : f32 to vector<1x1x128xf32>
    %34 = arith.divf %33, %32 : vector<1x1x128xf32>
    %cst_3 = arith.constant 0.000000e+00 : f32
    %35 = vector.broadcast %cst_3 : f32 to vector<1x1x128xf32>
    %36 = arith.mulf %18, %35 : vector<1x1x128xf32>
    %cst_4 = arith.constant 1.000000e+00 : f32
    %37 = vector.broadcast %cst_4 : f32 to vector<1x1x128xf32>
    %38 = arith.mulf %21, %37 : vector<1x1x128xf32>
    %39 = arith.addf %36, %38 : vector<1x1x128xf32>
    %cst_5 = arith.constant 0.000000e+00 : f32
    %40 = vector.broadcast %cst_5 : f32 to vector<1x1x128xf32>
    %41 = arith.mulf %24, %40 : vector<1x1x128xf32>
    %42 = arith.addf %39, %41 : vector<1x1x128xf32>
    %43 = arith.mulf %42, %34 : vector<1x1x128xf32>
    %cst_6 = arith.constant 0.000000e+00 : f32
    %44 = vector.broadcast %cst_6 : f32 to vector<1x1x128xf32>
    %45 = arith.maximumf %43, %44 : vector<1x1x128xf32>
    %cst_7 = arith.constant 5.000000e-01 : f32
    %46 = vector.broadcast %cst_7 : f32 to vector<1x1x128xf32>
    %47 = arith.mulf %46, %45 : vector<1x1x128xf32>
    %48 = tpu.iota {dimensions = array<i32: 1>} : vector<1x3x1xi32>
    %c0_i32 = arith.constant 0 : i32
    %49 = vector.broadcast %c0_i32 : i32 to vector<1x3x1xi32>
    %50 = arith.cmpi eq, %48, %49 : vector<1x3x1xi32>
    %c1_i32 = arith.constant 1 : i32
    %51 = vector.broadcast %c1_i32 : i32 to vector<1x3x1xi32>
    %52 = arith.cmpi eq, %48, %51 : vector<1x3x1xi32>
    %cst_8 = arith.constant 5.000000e-01 : f32
    %cst_9 = arith.constant 5.000000e-01 : f32
    %53 = vector.broadcast %cst_8 : f32 to vector<1x3x1xf32>
    %54 = vector.broadcast %cst_9 : f32 to vector<1x3x1xf32>
    %55 = arith.select %52, %53, %54 : vector<1x3x1xi1>, vector<1x3x1xf32>
    %cst_10 = arith.constant 5.000000e-01 : f32
    %56 = vector.broadcast %cst_10 : f32 to vector<1x3x1xf32>
    %57 = arith.select %50, %56, %55 : vector<1x3x1xi1>, vector<1x3x1xf32>
    %c0_i32_11 = arith.constant 0 : i32
    %58 = vector.broadcast %c0_i32_11 : i32 to vector<1x3x1xi32>
    %59 = arith.cmpi eq, %48, %58 : vector<1x3x1xi32>
    %c1_i32_12 = arith.constant 1 : i32
    %60 = vector.broadcast %c1_i32_12 : i32 to vector<1x3x1xi32>
    %61 = arith.cmpi eq, %48, %60 : vector<1x3x1xi32>
    %cst_13 = arith.constant 1.000000e+00 : f32
    %cst_14 = arith.constant 1.000000e+00 : f32
    %62 = vector.broadcast %cst_13 : f32 to vector<1x3x1xf32>
    %63 = vector.broadcast %cst_14 : f32 to vector<1x3x1xf32>
    %64 = arith.select %61, %62, %63 : vector<1x3x1xi1>, vector<1x3x1xf32>
    %cst_15 = arith.constant 1.000000e+00 : f32
    %65 = vector.broadcast %cst_15 : f32 to vector<1x3x1xf32>
    %66 = arith.select %59, %65, %64 : vector<1x3x1xi1>, vector<1x3x1xf32>
    %67 = vector.broadcast %66 : vector<1x3x1xf32> to vector<1x3x128xf32>
    %68 = vector.broadcast %47 : vector<1x1x128xf32> to vector<1x3x128xf32>
    %69 = arith.mulf %67, %68 : vector<1x3x128xf32>
    %70 = vector.broadcast %57 : vector<1x3x1xf32> to vector<1x3x128xf32>
    %71 = arith.addf %70, %69 : vector<1x3x128xf32>
    %c0_16 = arith.constant 0 : index
    %c0_17 = arith.constant 0 : index
    %c0_18 = arith.constant 0 : index
    %72 = vector.load %arg3[%c0_16, %c0_17, %c0_18] : memref<1x3x128xf32, #tpu.memory_space<vmem>>, vector<1x3x128xf32>
    %73 = arith.mulf %72, %71 : vector<1x3x128xf32>
    %c0_19 = arith.constant 0 : index
    %c0_20 = arith.constant 0 : index
    %c0_21 = arith.constant 0 : index
    %74 = vector.load %arg4[%c0_19, %c0_20, %c0_21] : memref<1x3x128xf32, #tpu.memory_space<vmem>>, vector<1x3x128xf32>
    tpu.vector_store %arg4[%c0_19, %c0_20, %c0_21], %73 {strides = array<i32>} : memref<1x3x128xf32, #tpu.memory_space<vmem>>, vector<1x3x128xf32>,
    return
  }
  func.func @transform_0(%arg0: i32, %arg1: i32) -> (i32, i32, i32) {
    %c0_i32 = arith.constant 0 : i32
    %c0_i32_0 = arith.constant 0 : i32
    return %arg0, %c0_i32, %arg1 : i32, i32, i32
  }
  func.func @transform_1(%arg0: i32, %arg1: i32) -> (i32, i32, i32) {
    %c0_i32 = arith.constant 0 : i32
    %c0_i32_0 = arith.constant 0 : i32
    return %arg0, %c0_i32, %arg1 : i32, i32, i32
  }
  func.func @transform_2(%arg0: i32, %arg1: i32) -> (i32, i32, i32) {
    %c0_i32 = arith.constant 0 : i32
    %c0_i32_0 = arith.constant 0 : i32
    return %arg0, %c0_i32, %arg1 : i32, i32, i32
  }
}

</mosaic_0001>

<bundles_post_ra>
// kernel: tpu_custom_call.1
= control target key start
LH: loop header
LB: loop body
LE: loop exit
PB: predicated region body
PF: predicated region fallthrough
CT: control target
= control target key end

     0   :  { %s448_s9 = smov 0   ;;  %s450_s10 = smov 0   ;;  %s488_s0 = inlined_call_operand.vmem [shape: f32[2,9,128], index: 0, kind: input, shape index: {}]   ;;  %s489_s1 = inlined_call_operand.vmem [shape: f32[2,3,128], index: 1, kind: input, shape index: {}]   ;;  %s490_s2 = inlined_call_operand.vmem [shape: f32[2,3,128], index: 2, kind: output, shape index: {}]  }
   0x1   :  { %s452_s11 = smov 0  }
   0x2 LB: > { %s24_s12 = sadd.s32 1, %s427_s10  ;;  %p373_p0 = scmp.ge.s32.totalorder %s431_s11, 1  ;;  %s431_s11 = sphi %s452_s11, %s12_s11   ;;  %s427_s10 = sphi %s450_s10, %s492_s10   ;;  %s423_s9 = sphi %s448_s9, %s491_s9  }
   0x3   : > { %p26_p1 = scmp.ge.s32.totalorder %s24_s12, 2  ;;  %p145_p2 = scmp.lt.s32.totalorder %s431_s11, 3 }
   0x5   : > { %s494_s12 = smov (%p26_p1, %s24_s12), 0  ;;  %p146_p3 = pnand %p373_p0, %p145_p2 }
   0x6   : > { %p179_p4 = scmp.lt.s32.totalorder (!%p146_p3), %s423_s9, 1  ;;  %v269_v39 = vlaneseq (!%p146_p3) }
   0x7   : > { %149 = sbr.rel (%p146_p3) target bundleno = 79 (0x4f), region = 28 }
   0x8   : > { %v270_v41 = vshrl.u32 (!%p146_p3), %v269_v39, 7 }
   0xa   : > { %v271_v45 = vsub.s32 (!%p146_p3), 7, %v270_v41 }
   0xe   : > { %s496_s9 = smov (!%p179_p4, %s423_s9), 1 }
   0xf   : > { %s380_s13 = sshll.u32 %s496_s9, 4  ;;  %s376_s17 = sshll.u32 %s496_s9, 2 }
  0x10   : > { %s186_s16 = scalar_lea.vmem %s488_s0, %s380_s13  ;;  %s193_s20 = scalar_lea.vmem %s489_s1, %s376_s17 }
  0x11   : > { %v201_v0 = vld [vmem:[%s186_s16] sm:$0xff]  ;;  %v202_v1 = vld [vmem:[%s186_s16 + $0x8] sm:$0x1]  ;;  %s200_s23 = scalar_lea.vmem %s490_s2, %s376_s17 }
  0x12   : > { %v204_v2 = vrot.slane %v201_v0, 5  ;;  %v208_v3 = vrot.slane %v201_v0, 3  ;;  %v274_v48 = vld [vmem:[%s193_s20] sm:$0x7] }
  0x14   : > { %v206_v4 = vsub.f32 %v201_v0, %v204_v2  ;;  %v207_v5 = vsub.f32 %v202_v1, %v204_v2  ;;  %v210_v6 = vsub.f32 %v201_v0, %v208_v3 }
  0x16   : > { %v212_v7 = vrot.slane %v210_v6, 3  ;;  %v215_v8 = vrot.slane %v210_v6, 1  ;;  %v223_v9 = vrot.slane %v210_v6, 4  ;;  %v222_v10 = vmul.f32 %v210_v6, %v207_v5 }
  0x18   : > { %v214_v11 = vmul.f32 %v212_v7, %v206_v4  ;;  %v217_v12 = vmul.f32 %v215_v8, %v207_v5  ;;  %v225_v13 = vmul.f32 %v223_v9, %v206_v4  ;;  %v230_v14 = vmul.f32 %v215_v8, %v206_v4 }
  0x1a   : > { %v219_v15 = vrot.slane %v217_v12, 1  ;;  %v227_v16 = vrot.slane %v225_v13, 6  ;;  %v232_v17 = vrot.slane %v230_v14, 1 }
  0x1c   : > { %v221_v18 = vsub.f32 %v214_v11, %v219_v15  ;;  %v229_v19 = vsub.f32 %v222_v10, %v227_v16  ;;  %v234_v20 = vsub.f32 %v214_v11, %v232_v17 }
  0x1e   : > { %v235_v21 = vmul.f32 %v221_v18, %v221_v18  ;;  %v236_v22 = vmul.f32 %v229_v19, %v229_v19  ;;  %v241_v23 = vmul.f32 %v234_v20, %v234_v20  ;;  %v256_v34 = vmul.f32 0.0, %v221_v18 }
  0x1f   : > { %v258_v35 = vrot.slane %v229_v19, 1  ;;  %v261_v36 = vmul.f32 0.0, %v234_v20 }
  0x20   : > { %v238_v24 = vrot.slane %v236_v22, 1  ;;  %v243_v25 = vrot.slane %v241_v23, 7 }
  0x21   : > { %v260_v37 = vadd.f32 %v258_v35, %v256_v34  ;;  %v263_v38 = vrot.slane %v261_v36, 7 }
  0x22   : > { %v240_v26 = vadd.f32 %v238_v24, %v235_v21 }
  0x23   : > { %v265_v40 = vadd.f32 %v263_v38, %v260_v37 }
  0x24   : > { %v245_v27 = vadd.f32 %v243_v25, %v240_v26 }
  0x26   : > { %405 = vrsqrt.f32 %v245_v27  ;;  %vm248_vm0 = vcmp.eq.f32.partialorder %v245_v27, inf  ;;  %v251_v29 = vand.u32 2147483648, %v245_v27  ;;  %vm250_vm1 = vcmp.eq.f32.partialorder %v245_v27, 0.0 }
  0x30   : > { %v406_v28 = vpop.eup %405 }
  0x31   : > { %v247_v30 = vmul.f32 %v406_v28, %v245_v27 }
  0x33   : > { %v249_v31 = vsel %vm248_vm0, %v245_v27, %v247_v30 }
  0x34   : > { %v252_v32 = vsel %vm250_vm1, %v251_v29, %v249_v31 }
  0x35   : > { %v253_v33 = vmax.f32 %v252_v32, 1e-06 }
  0x37   : > { %407 = vrcp.f32 %v253_v33 }
  0x41   : > { %v408_v42 = vpop.eup %407 }
  0x42   : > { %v266_v43 = vmul.f32 %v408_v42, %v265_v40 }
  0x44   : > { %v267_v44 = vmax.f32 %v266_v43, 0.0 }
  0x46   : > { %v268_v46 = vmul.f32 0.5, %v267_v44 }
  0x48   : > { %v272_v47 = vrot.slane %v268_v46, %v271_v45 }
  0x4a   : > { %v273_v49 = vadd.f32 0.5, %v272_v47 }
  0x4c   : > { %v275_v50 = vmul.f32 %v274_v48, %v273_v49 }
  0x4e   : > { %276 = vst [vmem:[%s200_s23] sm:$0x7] %v275_v50 }
  0x4f PF: > { %s12_s11 = sadd.s32 1, %s431_s11   ;;  %s491_s9 = smov %s427_s10 }
  0x50   : > { %p9_p5 = scmp.ge.s32.totalorder %s12_s11, 4   ;;  %s492_s10 = smov %s494_s12 }
  0x52   :  { %11 = sbr.rel (!%p9_p5) target bundleno = 2 (0x2), region = 61 }

</bundles_post_ra>
